<compile_context>
chip_gen: v6e
topology: v6e:2x2x1
jax: 0.10.0
libtpu: 0.0.40
codegen_flags: <defaults>
</compile_context>

<pallas_src>
import functools
import math

import jax
import jax.numpy as jnp
from jax import lax
from jax.experimental import pallas as pl
from jax.experimental.pallas import tpu as pltpu

_IN = 53      # raw feature width
_X1 = 54      # 53 features + appended row norm
_H1 = 16      # lin1 out
_H2 = 8       # lin3 out (encoding)
_OUT = 108    # packed output: [decode(54) | x1(54)]
_SQRT2 = math.sqrt(2.0)


def ae_kernel(x_ref, w1_ref, b1_ref, w3_ref, b3_ref, wd_ref, bd_ref, out_ref):
    # x_ref: (tm, 54) f32 — column 53 is zero padding supplied by the wrapper,
    # so sum-of-squares over 54 lanes equals the sum over the real 53 features.
    xp = x_ref[...]
    sq = jnp.sum(xp * xp, axis=1, keepdims=True)          # (tm, 1)
    nrm = jnp.sqrt(sq)                                     # ||x0|| per row (torch.norm dim=1)

    # ||cat([x0, ||x0||])|| = sqrt(2) * ||x0||; F.normalize eps clamp; one reciprocal,
    # then multiplies instead of divides.
    inv = pl.reciprocal(jnp.maximum(nrm * _SQRT2, 1e-12))  # (tm, 1)

    # Build x1 in registers: replace the padding lane (index 53) with the row norm,
    # then scale.  No VMEM round trip, no 1-lane masked store.
    col = lax.broadcasted_iota(jnp.int32, xp.shape, 1)
    x1 = jnp.where(col == _IN, nrm, xp) * inv              # (tm, 54), L2-normalized

    # encoder
    h = jnp.maximum(
        jnp.dot(x1, w1_ref[...], preferred_element_type=jnp.float32) + b1_ref[...], 0.0
    )                                                      # relu(lin1): (tm, 16)
    e = jnp.maximum(
        jnp.dot(h, w3_ref[...], preferred_element_type=jnp.float32) + b3_ref[...], 0.0
    )                                                      # relu(lin3): (tm, 8)

    # decoder: ilin2(ilin3(e)) fused into a single linear (no activation between them)
    d = jnp.dot(e, wd_ref[...], preferred_element_type=jnp.float32) + bd_ref[...]  # (tm, 54)

    # packed writeback: [decode | x1] into one (tm, 108) slab
    out_ref[:, 0:_X1] = d
    out_ref[:, _X1:_OUT] = x1


def _round_up(x, m):
    return ((x + m - 1) // m) * m


def _linear_params(key, in_f, out_f):
    """Deterministic nn.Linear-style init: U(-1/sqrt(in), 1/sqrt(in))."""
    kw, kb = jax.random.split(key)
    bound = 1.0 / math.sqrt(in_f)
    w = jax.random.uniform(kw, (out_f, in_f), jnp.float32, -bound, bound)
    b = jax.random.uniform(kb, (out_f,), jnp.float32, -bound, bound)
    return w, b


def make_ae_params(key):
    k1, k3, ik3, ik2 = jax.random.split(key, 4)
    w1, b1 = _linear_params(k1, 54, 16)     # lin1
    w3, b3 = _linear_params(k3, 16, 8)      # lin3
    iw3, ib3 = _linear_params(ik3, 8, 16)   # ilin3
    iw2, ib2 = _linear_params(ik2, 16, 54)  # ilin2
    # lin2/ilin1/batchnorms are dead code in the torch forward; not materialized.
    return dict(w1=w1, b1=b1, w3=w3, b3=b3, iw3=iw3, ib3=ib3, iw2=iw2, ib2=ib2)


@functools.partial(jax.jit, static_argnames=("tile_m",))
def ae_forward(x, params, tile_m=512):
    # robust "squeeze": reshape instead of squeeze() so batch=1 also works
    x0 = jnp.reshape(x, (-1, _IN)).astype(jnp.float32)
    n = x0.shape[0]

    # batch tile: multiple of 8 (sublane), default 512 (256-aligned for MXU, fits v7x VMEM)
    tm = min(tile_m, _round_up(n, 8))
    n_pad = _round_up(n, tm)
    # pad rows to a tile multiple and add one zero column (becomes the norm lane in-kernel)
    xpad = jnp.pad(x0, ((0, n_pad - n), (0, 1)))          # (n_pad, 54)

    # fuse the activation-free decoder into a single linear layer
    wd = params["iw3"].T @ params["iw2"].T                # (8, 54)
    bd = params["ib3"] @ params["iw2"].T + params["ib2"]  # (54,)

    args = (
        xpad,
        params["w1"].T, params["b1"].reshape(1, -1),
        params["w3"].T, params["b3"].reshape(1, -1),
        wd, bd.reshape(1, -1),
    )

    def resident(shape):
        return pl.BlockSpec(shape, lambda i: (0, 0))      # stays in VMEM across the grid

    flops = 2 * n_pad * (_X1 * _H1 + _H1 * _H2 + _H2 * _X1)
    bytes_accessed = 4 * (
        n_pad * (_X1 + _OUT)
        + _X1 * _H1 + _H1 + _H1 * _H2 + _H2 + _H2 * _X1 + _X1
    )

    out = pl.pallas_call(
        ae_kernel,
        out_shape=jax.ShapeDtypeStruct((n_pad, _OUT), jnp.float32),
        grid=(n_pad // tm,),
        in_specs=[
            pl.BlockSpec((tm, _X1), lambda i: (i, 0)),    # x tile, pipelined over batch
            resident((_X1, _H1)), resident((1, _H1)),     # lin1 W^T, b
            resident((_H1, _H2)), resident((1, _H2)),     # lin3 W^T, b
            resident((_H2, _X1)), resident((1, _X1)),     # fused decoder W, b
        ],
        out_specs=pl.BlockSpec((tm, _OUT), lambda i: (i, 0)),
        compiler_params=pltpu.CompilerParams(
            dimension_semantics=("parallel",),
        ),
        cost_estimate=pl.CostEstimate(
            flops=flops,
            transcendentals=2 * n_pad,
            bytes_accessed=bytes_accessed,
        ),
    )(*args)

    decode = out[:n, 0:_X1]
    x1 = out[:n, _X1:_OUT]
    return decode, x1


def _reference(x, params):
    """Pure-JAX reference mirroring the live torch forward path."""
    x0 = jnp.reshape(x, (-1, _IN)).astype(jnp.float32)
    nrm = jnp.linalg.norm(x0, axis=1, keepdims=True)
    x1 = jnp.concatenate([x0, nrm], axis=1)
    x1 = x1 / jnp.maximum(jnp.linalg.norm(x1, axis=1, keepdims=True), 1e-12)
    h = jax.nn.relu(x1 @ params["w1"].T + params["b1"])
    e = jax.nn.relu(h @ params["w3"].T + params["b3"])
    d = e @ params["iw3"].T + params["ib3"]
    d = d @ params["iw2"].T + params["ib2"]
    return d, x1


if __name__ == "__main__":
    key = jax.random.PRNGKey(0)
    kx, kp = jax.random.split(key)

    # input: (batch=8, 1, 53) — reshape -> (8, 53); 53 + row-norm = 54 features for lin1
    x = jax.random.normal(kx, (8, 1, 53), dtype=jnp.float32)
    params = make_ae_params(kp)

    dec, x1 = ae_forward(x, params)
    jax.block_until_ready((dec, x1))

    dec_ref, x1_ref = _reference(x, params)
    assert dec.shape == (8, 54) and x1.shape == (8, 54)
    assert jnp.allclose(dec, dec_ref, atol=1e-5), "decode mismatch"
    assert jnp.allclose(x1, x1_ref, atol=1e-5), "x1 mismatch"

    print("KERNEL_OK")
</pallas_src>

<mosaic_0001>
module attributes {stable_mosaic.version = 11 : i64} {
  func.func @ae_kernel(%arg0: i32, %arg1: memref<8x54xf32, #tpu.memory_space<vmem>>, %arg2: memref<54x16xf32, #tpu.memory_space<vmem>>, %arg3: memref<1x16xf32, #tpu.memory_space<vmem>>, %arg4: memref<16x8xf32, #tpu.memory_space<vmem>>, %arg5: memref<1x8xf32, #tpu.memory_space<vmem>>, %arg6: memref<8x54xf32, #tpu.memory_space<vmem>>, %arg7: memref<1x54xf32, #tpu.memory_space<vmem>>, %arg8: memref<8x108xf32, #tpu.memory_space<vmem>>) attributes {dimension_semantics = [#tpu.dimension_semantics<parallel>], iteration_bounds = array<i64: 1>, scalar_prefetch = 0 : i64, scratch_operands = 0 : i64, tpu.core_type = #tpu.core_type<tc>, window_params = [{transform_indices = @transform_0, window_bounds = array<i64: 8, 54>}, {pipeline_mode = #tpu.pipeline_mode<synchronous>, transform_indices = @transform_1, window_bounds = array<i64: 54, 16>}, {pipeline_mode = #tpu.pipeline_mode<synchronous>, transform_indices = @transform_2, window_bounds = array<i64: 1, 16>}, {pipeline_mode = #tpu.pipeline_mode<synchronous>, transform_indices = @transform_3, window_bounds = array<i64: 16, 8>}, {pipeline_mode = #tpu.pipeline_mode<synchronous>, transform_indices = @transform_4, window_bounds = array<i64: 1, 8>}, {pipeline_mode = #tpu.pipeline_mode<synchronous>, transform_indices = @transform_5, window_bounds = array<i64: 8, 54>}, {pipeline_mode = #tpu.pipeline_mode<synchronous>, transform_indices = @transform_6, window_bounds = array<i64: 1, 54>}, {transform_indices = @transform_7, window_bounds = array<i64: 8, 108>}]} {
    %c0 = arith.constant 0 : index
    %c0_0 = arith.constant 0 : index
    %0 = vector.load %arg1[%c0, %c0_0] : memref<8x54xf32, #tpu.memory_space<vmem>>, vector<8x54xf32>
    %1 = arith.mulf %0, %0 : vector<8x54xf32>
    %cst = arith.constant dense<0.000000e+00> : vector<8xf32>
    %2 = vector.multi_reduction <add>, %1, %cst [1] : vector<8x54xf32> to vector<8xf32>
    %3 = vector.shape_cast %2 : vector<8xf32> to vector<8x1xf32>
    %4 = math.sqrt %3 : vector<8x1xf32>
    %cst_1 = arith.constant 1.41421354 : f32
    %5 = vector.broadcast %cst_1 : f32 to vector<8x1xf32>
    %6 = arith.mulf %4, %5 : vector<8x1xf32>
    %cst_2 = arith.constant 9.99999996E-13 : f32
    %7 = vector.broadcast %cst_2 : f32 to vector<8x1xf32>
    %8 = arith.maximumf %6, %7 : vector<8x1xf32>
    %9 = tpu.reciprocal %8 : vector<8x1xf32> -> vector<8x1xf32>
    %10 = tpu.iota {dimensions = array<i32: 1>} : vector<8x54xi32>
    %c53_i32 = arith.constant 53 : i32
    %11 = vector.broadcast %c53_i32 : i32 to vector<8x54xi32>
    %12 = arith.cmpi eq, %10, %11 : vector<8x54xi32>
    %13 = vector.shape_cast %4 : vector<8x1xf32> to vector<8x1xf32>
    %14 = vector.broadcast %13 : vector<8x1xf32> to vector<8x54xf32>
    %15 = arith.select %12, %14, %0 : vector<8x54xi1>, vector<8x54xf32>
    %16 = vector.broadcast %9 : vector<8x1xf32> to vector<8x54xf32>
    %17 = arith.mulf %15, %16 : vector<8x54xf32>
    %c0_3 = arith.constant 0 : index
    %c0_4 = arith.constant 0 : index
    %18 = vector.load %arg2[%c0_3, %c0_4] : memref<54x16xf32, #tpu.memory_space<vmem>>, vector<54x16xf32>
    %cst_5 = arith.constant dense<0.000000e+00> : vector<8x16xf32>
    %19 = tpu.matmul %17, %18, %cst_5 {dimension_numbers = #tpu.dot_dimension_numbers<[1], [0], [0], [1], [0, 0, 1, 1], [], []>} : vector<8x54xf32>, vector<54x16xf32>, vector<8x16xf32> -> vector<8x16xf32>
    %c0_6 = arith.constant 0 : index
    %c0_7 = arith.constant 0 : index
    %20 = vector.load %arg3[%c0_6, %c0_7] : memref<1x16xf32, #tpu.memory_space<vmem>>, vector<1x16xf32>
    %21 = vector.broadcast %20 : vector<1x16xf32> to vector<8x16xf32>
    %22 = arith.addf %19, %21 : vector<8x16xf32>
    %cst_8 = arith.constant 0.000000e+00 : f32
    %23 = vector.broadcast %cst_8 : f32 to vector<8x16xf32>
    %24 = arith.maximumf %22, %23 : vector<8x16xf32>
    %c0_9 = arith.constant 0 : index
    %c0_10 = arith.constant 0 : index
    %25 = vector.load %arg4[%c0_9, %c0_10] : memref<16x8xf32, #tpu.memory_space<vmem>>, vector<16x8xf32>
    %cst_11 = arith.constant dense<0.000000e+00> : vector<8x8xf32>
    %26 = tpu.matmul %24, %25, %cst_11 {dimension_numbers = #tpu.dot_dimension_numbers<[1], [0], [0], [1], [0, 0, 1, 1], [], []>} : vector<8x16xf32>, vector<16x8xf32>, vector<8x8xf32> -> vector<8x8xf32>
    %c0_12 = arith.constant 0 : index
    %c0_13 = arith.constant 0 : index
    %27 = vector.load %arg5[%c0_12, %c0_13] : memref<1x8xf32, #tpu.memory_space<vmem>>, vector<1x8xf32>
    %28 = vector.broadcast %27 : vector<1x8xf32> to vector<8x8xf32>
    %29 = arith.addf %26, %28 : vector<8x8xf32>
    %cst_14 = arith.constant 0.000000e+00 : f32
    %30 = vector.broadcast %cst_14 : f32 to vector<8x8xf32>
    %31 = arith.maximumf %29, %30 : vector<8x8xf32>
    %c0_15 = arith.constant 0 : index
    %c0_16 = arith.constant 0 : index
    %32 = vector.load %arg6[%c0_15, %c0_16] : memref<8x54xf32, #tpu.memory_space<vmem>>, vector<8x54xf32>
    %cst_17 = arith.constant dense<0.000000e+00> : vector<8x54xf32>
    %33 = tpu.matmul %31, %32, %cst_17 {dimension_numbers = #tpu.dot_dimension_numbers<[1], [0], [0], [1], [0, 0, 1, 1], [], []>} : vector<8x8xf32>, vector<8x54xf32>, vector<8x54xf32> -> vector<8x54xf32>
    %c0_18 = arith.constant 0 : index
    %c0_19 = arith.constant 0 : index
    %34 = vector.load %arg7[%c0_18, %c0_19] : memref<1x54xf32, #tpu.memory_space<vmem>>, vector<1x54xf32>
    %35 = vector.broadcast %34 : vector<1x54xf32> to vector<8x54xf32>
    %36 = arith.addf %33, %35 : vector<8x54xf32>
    %c0_20 = arith.constant 0 : index
    %c0_21 = arith.constant 0 : index
    %37 = vector.load %arg8[%c0_20, %c0_21] : memref<8x108xf32, #tpu.memory_space<vmem>>, vector<8x54xf32>
    tpu.vector_store %arg8[%c0_20, %c0_21], %36 {strides = array<i32>} : memref<8x108xf32, #tpu.memory_space<vmem>>, vector<8x54xf32>,
    %c0_22 = arith.constant 0 : index
    %c54 = arith.constant 54 : index
    %38 = vector.load %arg8[%c0_22, %c54] : memref<8x108xf32, #tpu.memory_space<vmem>>, vector<8x54xf32>
    tpu.vector_store %arg8[%c0_22, %c54], %17 {strides = array<i32>} : memref<8x108xf32, #tpu.memory_space<vmem>>, vector<8x54xf32>,
    return
  }
  func.func @transform_0(%arg0: i32) -> (i32, i32) {
    %c0_i32 = arith.constant 0 : i32
    %c0_i32_0 = arith.constant 0 : i32
    return %arg0, %c0_i32 : i32, i32
  }
  func.func @transform_1(%arg0: i32) -> (i32, i32) {
    %c0_i32 = arith.constant 0 : i32
    %c0_i32_0 = arith.constant 0 : i32
    %c0_i32_1 = arith.constant 0 : i32
    return %c0_i32, %c0_i32_0 : i32, i32
  }
  func.func @transform_2(%arg0: i32) -> (i32, i32) {
    %c0_i32 = arith.constant 0 : i32
    %c0_i32_0 = arith.constant 0 : i32
    %c0_i32_1 = arith.constant 0 : i32
    return %c0_i32, %c0_i32_0 : i32, i32
  }
  func.func @transform_3(%arg0: i32) -> (i32, i32) {
    %c0_i32 = arith.constant 0 : i32
    %c0_i32_0 = arith.constant 0 : i32
    %c0_i32_1 = arith.constant 0 : i32
    return %c0_i32, %c0_i32_0 : i32, i32
  }
  func.func @transform_4(%arg0: i32) -> (i32, i32) {
    %c0_i32 = arith.constant 0 : i32
    %c0_i32_0 = arith.constant 0 : i32
    %c0_i32_1 = arith.constant 0 : i32
    return %c0_i32, %c0_i32_0 : i32, i32
  }
  func.func @transform_5(%arg0: i32) -> (i32, i32) {
    %c0_i32 = arith.constant 0 : i32
    %c0_i32_0 = arith.constant 0 : i32
    %c0_i32_1 = arith.constant 0 : i32
    return %c0_i32, %c0_i32_0 : i32, i32
  }
  func.func @transform_6(%arg0: i32) -> (i32, i32) {
    %c0_i32 = arith.constant 0 : i32
    %c0_i32_0 = arith.constant 0 : i32
    %c0_i32_1 = arith.constant 0 : i32
    return %c0_i32, %c0_i32_0 : i32, i32
  }
  func.func @transform_7(%arg0: i32) -> (i32, i32) {
    %c0_i32 = arith.constant 0 : i32
    %c0_i32_0 = arith.constant 0 : i32
    return %arg0, %c0_i32 : i32, i32
  }
}

</mosaic_0001>

<bundles_post_ra>
// kernel: ae_forward.1
= control target key start
LH: loop header
LB: loop body
LE: loop exit
PB: predicated region body
PF: predicated region fallthrough
CT: control target
= control target key end

     0   :  { %vm28_vm0 = vcmask 441344   ;;  %vm64_vm1 = vcmask 1045504   ;;  %v371_v3 = vmov 0.0   ;;  %vm372_vm2 = vmmov 0   ;;  %s468_s0 = inlined_call_operand.vmem [shape: f32[8,54], index: 0, kind: input, shape index: {}]   ;;  %s469_s1 = inlined_call_operand.vmem [shape: f32[54,16], index: 1, kind: input, shape index: {}]   ;;  %s470_s3 = inlined_call_operand.vmem [shape: f32[16,8], index: 3, kind: input, shape index: {}]   ;;  %s471_s2 = inlined_call_operand.vmem [shape: f32[1,16], index: 2, kind: input, shape index: {}]   ;;  %s472_s5 = inlined_call_operand.vmem [shape: f32[8,54], index: 5, kind: input, shape index: {}]   ;;  %s473_s4 = inlined_call_operand.vmem [shape: f32[1,8], index: 4, kind: input, shape index: {}]   ;;  %s474_s6 = inlined_call_operand.vmem [shape: f32[1,54], index: 6, kind: input, shape index: {}]   ;;  %s475_s7 = inlined_call_operand.vmem [shape: f32[8,108], index: 7, kind: output, shape index: {}]  }
   0x1   :  { %v26_v0 = vld [vmem:[%s468_s0] sm:$0xff]  ;;  %335 = vmatprep.subr.mxu0 %v371_v3  ;;  %v53_v4 = vld [vmem:[%s469_s1 + $0x30] sm:$0x3f]  ;;  %v52_v5 = vld [vmem:[%s469_s1 + $0x28] sm:$0xff]  ;;  %349 = vmatprep.mubr.msk.f32.mxu0 %vm372_vm2, %v371_v3  ;;  %v42_v19 = vlaneseq  ;;  %vm148_vm6 = vcmask 130048   ;;  %vm231_vm7 = vcmask 64512  }
   0x2   :  { %v27_v1 = vmul.f32 %v26_v0, %v26_v0  ;;  %336 = vmatpush3.msk.msra.mxu0 %vm64_vm1, %v53_v4  ;;  %352 = vmatprep.subr.mxu1 %v371_v3  ;;  %v51_v6 = vld [vmem:[%s469_s1 + $0x20] sm:$0xff]  ;;  %v50_v7 = vld [vmem:[%s469_s1 + $0x18] sm:$0xff]  ;;  %v49_v8 = vld [vmem:[%s469_s1 + $0x10] sm:$0xff]  ;;  %vm309_vm8 = vcmask 884144  }
   0x3   :  { %337 = vmatprep.subr.mxu0 %v371_v3  ;;  %356 = vmatprep.mubr.msk.f32.mxu1 %vm372_vm2, %v371_v3  ;;  %v48_v9 = vld [vmem:[%s469_s1 + $0x8] sm:$0xff]  ;;  %v47_v10 = vld [vmem:[%s469_s1] sm:$0xff]  ;;  %v43_v20 = vand.u32 127, %v42_v19  ;;  %s373_s1 = smov 54  }
   0x4   :  { %v29_v2 = vsel %vm28_vm0, %v27_v1, 0.0  ;;  %338 = vmatpush3.msra.mxu0 %v52_v5  ;;  %v140_v24 = vld [vmem:[%s470_s3 + $0x8] sm:$0xff]  ;;  %v139_v25 = vld [vmem:[%s470_s3] sm:$0xff] }
   0x5   :  { %30 = vadd.xlane.f32.xlu0 %v29_v2  ;;  %339 = vmatprep.subr.mxu0 %v371_v3  ;;  %vm44_vm5 = vcmp.eq.s32.totalorder %v43_v20, 53  ;;  %v315_v26 = vld [vmem:[%s471_s2] ss:$0 sm:$0xff] }
   0x6   :  { %340 = vmatpush3.msra.mxu0 %v51_v6  ;;  %353 = vmatpush3.msra.mxu1 %v140_v24  ;;  %v223_v31 = vld [vmem:[%s472_s5] sm:$0xff] }
   0x7   :  { %341 = vmatprep.subr.mxu0 %v371_v3  ;;  %354 = vmatprep.subr.mxu1 %v371_v3  ;;  %v318_v32 = vld [vmem:[%s473_s4] ss:$0 sm:$0xff] }
   0x8   :  { %342 = vmatpush3.msra.mxu0 %v50_v7  ;;  %355 = vmatpush3.msra.mxu1 %v139_v25  ;;  %v320_v37 = vld [vmem:[%s474_s6] ss:$0 sm:$0xff] }
   0x9   :  { %343 = vmatprep.subr.mxu0 %v371_v3  ;;  %359 = vmatprep.subr.mxu1 %v371_v3 }
   0xa   :  { %344 = vmatpush3.msra.mxu0 %v49_v8 }
   0xb   :  { %345 = vmatprep.subr.mxu0 %v371_v3 }
   0xc   :  { %346 = vmatpush3.msra.mxu0 %v48_v9 }
   0xd   :  { %347 = vmatprep.subr.mxu0 %v371_v3 }
   0xe   :  { %348 = vmatpush3.msra.mxu0 %v47_v10 }
  0x8e   :  { %v31_v11 = vpop.xlane.xlu0 %30 }
  0x8f   :  { %367 = vrsqrt.f32 %v31_v11  ;;  %vm34_vm3 = vcmp.eq.f32.partialorder %v31_v11, inf  ;;  %v37_v14 = vand.u32 2147483648, %v31_v11  ;;  %vm36_vm4 = vcmp.eq.f32.partialorder %v31_v11, 0.0 }
  0x9c   :  { %v368_v12 = vpop.eup %367 }
  0x9d   :  { %v33_v13 = vmul.f32 %v368_v12, %v31_v11 }
  0x9f   :  { %v35_v15 = vsel %vm34_vm3, %v31_v11, %v33_v13 }
  0xa0   :  { %v38_v16 = vsel %vm36_vm4, %v37_v14, %v35_v15 }
  0xa1   :  { %v39_v17 = vmul.f32 1.4142135, %v38_v16  ;;  %v45_v22 = vsel %vm44_vm5, %v38_v16, %v26_v0 }
  0xa3   :  { %v40_v18 = vmax.f32 %v39_v17, 1e-12 }
  0xa5   :  { %369 = vrcp.f32 %v40_v18 }
  0xb2   :  { %v370_v21 = vpop.eup %369 }
  0xb3   :  { %v46_v23 = vmul.f32 %v370_v21, %v45_v22 }
  0xb5   :  { %306 = vrot.lane.b32.xlu0 %v46_v23, %s373_s1  ;;  %350 = vmatmul.mubr.msk.f32.vlgmr.msra.gmra.mxu0 %vm28_vm0, %v46_v23 }
 0x127   :  { %v307_v41 = vpop.permute.xlu0 %306 }
 0x175   :  { %v134_v27 = vpop.f32.mrf.mxu0 }
 0x176   :  { %v135_v28 = vadd.f32 %v315_v26, %v134_v27 }
 0x177   :  { %v351_v29 = vpop.f32.mrf.mxu0 }
 0x178   :  { %v138_v30 = vmax.f32 %v135_v28, 0.0 }
 0x17a   :  { %357 = vmatmul.mubr.msk.f32.vlgmr.msra.gmra.mxu1 %vm148_vm6, %v138_v30 }
 0x17b   :  { %361 = vmatprep.mubr.msk.f32.mxu1 %vm372_vm2, %v371_v3  ;;  %360 = vmatpush3.msra.mxu1 %v223_v31 }
 0x23a   :  { %v218_v33 = vpop.f32.mrf.mxu1 }
 0x23b   :  { %v219_v34 = vadd.f32 %v318_v32, %v218_v33 }
 0x23c   :  { %v358_v35 = vpop.f32.mrf.mxu1 }
 0x23d   :  { %v222_v36 = vmax.f32 %v219_v34, 0.0 }
 0x23f   :  { %362 = vmatmul.mubr.msk.f32.vlgmr.msra.gmra.mxu1 %vm231_vm7, %v222_v36 }
 0x2ff   :  { %v301_v38 = vpop.f32.mrf.mxu1 }
 0x300   :  { %v302_v39 = vadd.f32 %v320_v37, %v301_v38 }
 0x301   :  { %v363_v40 = vpop.f32.mrf.mxu1 }
 0x302   :  { %305 = vst.msk [vmem:[%s475_s7] sm:$0xff] %vm28_vm0, %v302_v39 }
 0x303   :  { %310 = vst.msk [vmem:[%s475_s7] sm:$0xff] %vm309_vm8, %v307_v41 }

</bundles_post_ra>
